<compile_context>
chip_gen: v7x
topology: tpu7x:2x2x1
jax: 0.10.0
libtpu: 0.0.40
codegen_flags: <defaults>
</compile_context>

<pallas_src>
import jax
import jax.numpy as jnp
from jax.experimental import pallas as pl
from jax.experimental.pallas import tpu as pltpu

_MIB = 1024 * 1024


def _round_up(a, b):
    return ((a + b - 1) // b) * b


def _min_sublane_rows(dtype):
    dsize = jnp.dtype(dtype).itemsize
    if dsize >= 4:
        return 8
    if dsize == 2:
        return 16
    return 32


def _tpu_info():
    """(num_tensorcores_per_chip, per-core VMEM bytes, looks_like_v7x)."""
    vmem_cap = 64 * _MIB      # conservative default (v7x per-TC VMEM)
    num_tc = 1
    is_v7 = False
    try:
        vmem_cap = int(pltpu.get_tpu_info().vmem_capacity_bytes)
    except Exception:
        pass
    try:
        kind = jax.devices()[0].device_kind.lower()
        # chips whose 2 TensorCores can shard a "parallel" grid axis
        if ("v4" in kind) or ("v5p" in kind) or ("v7" in kind):
            num_tc = 2
        if "v7" in kind:
            is_v7 = True
    except Exception:
        pass
    return num_tc, vmem_cap, is_v7


def _vmem_limit(resident_bytes, vmem_cap):
    # resident already includes double-buffered in/out; add a small margin,
    # never go below the default scope, leave headroom under the physical cap.
    limit = resident_bytes + 8 * _MIB
    limit = max(limit, 32 * _MIB)
    limit = min(limit, max(vmem_cap - 8 * _MIB, 32 * _MIB))
    return int(limit)


def _pick_tile_rows(rows, d_pad, dtype, num_tc, vmem_cap):
    """Row-tile size for a (tile_rows, d_pad) block from a VMEM budget."""
    dsize = jnp.dtype(dtype).itemsize
    min_rows = _min_sublane_rows(dtype)

    # resident bytes per tiled row: in + out double-buffered in native dtype
    # plus ~2 f32 in-kernel temporaries (upcast x, exp)
    bytes_per_row = d_pad * (4 * dsize + 2 * 4)

    if rows <= min_rows:
        # block second-to-last dim equals the full array dim -> always legal
        return rows, bytes_per_row

    budget = min(vmem_cap // 2, 64 * _MIB)

    # ~2 MiB of input payload per block is already ~85% of the HBM roofline
    target_payload = 2 * _MIB
    tile = max(min_rows, target_payload // max(d_pad * dsize, 1))
    tile = min(tile, max(min_rows, budget // max(bytes_per_row, 1)))

    # Split across TensorCores only when the chip actually has two of them,
    # and split into balanced halves rounded up to the sublane multiple so
    # neither core ends up with a tiny partial last block.
    if num_tc >= 2 and rows >= 2 * min_rows:
        half = _round_up((rows + 1) // 2, min_rows)
        tile = min(tile, half)

    tile = min(tile, rows)
    tile = max(min_rows, (tile // min_rows) * min_rows)
    tile = min(tile, rows)
    return tile, bytes_per_row


# ----------------------------- full-D kernels ------------------------------

def _softmax_kernel(x_ref, o_ref):
    # x_ref / o_ref: (tile_rows, D_pad) block in VMEM
    x = x_ref[...].astype(jnp.float32)
    m = jnp.max(x, axis=-1, keepdims=True)
    e = jnp.exp(x - m)
    s = jnp.sum(e, axis=-1, keepdims=True)
    # exact division: the kernel is HBM-bound so the VPU divide is hidden
    # filler, and rows sum to 1 (the approx EUP reciprocal did not).
    o_ref[...] = (e / s).astype(o_ref.dtype)


def _softmax_kernel_mxu_sum(x_ref, o_ref):
    # v7x small-D variant: at ~3.2 TB/s/TC the cross-lane reductions can become
    # the binding slot; do the row-sum on the idle MXU, keep only max on XLU.
    # TODO(synk): confirm from a bundle dump that the XLU is actually binding.
    x = x_ref[...].astype(jnp.float32)
    m = jnp.max(x, axis=-1, keepdims=True)
    e = jnp.exp(x - m)
    ones = jnp.ones((x.shape[-1], 1), jnp.float32)
    s = jnp.dot(e, ones, preferred_element_type=jnp.float32)
    o_ref[...] = (e / s).astype(o_ref.dtype)


def _softmax_rows_full_d(x2, num_tc, vmem_cap, is_v7):
    rows, d = x2.shape
    dtype = x2.dtype

    # Lane-dense output: pad D to a multiple of 128 with the most-negative
    # finite value (exp(pad - max) == 0, so row sums are unchanged).
    d_pad = _round_up(d, 128)
    if d_pad != d:
        x2 = jnp.pad(x2, ((0, 0), (0, d_pad - d)),
                     constant_values=jnp.finfo(dtype).min)

    tile_rows, bytes_per_row = _pick_tile_rows(rows, d_pad, dtype, num_tc, vmem_cap)
    # Partial last row block: garbage rows may produce inf/NaN inside the
    # kernel, but rows are independent and Pallas masks the OOB store.
    grid = (pl.cdiv(rows, tile_rows),)

    kernel = _softmax_kernel_mxu_sum if (is_v7 and d_pad <= 256) else _softmax_kernel

    out = pl.pallas_call(
        kernel,
        out_shape=jax.ShapeDtypeStruct((rows, d_pad), dtype),
        grid_spec=pltpu.PrefetchScalarGridSpec(
            num_scalar_prefetch=0,
            grid=grid,
            in_specs=[pl.BlockSpec((tile_rows, d_pad), lambda i: (i, 0))],
            out_specs=pl.BlockSpec((tile_rows, d_pad), lambda i: (i, 0)),
        ),
        compiler_params=pltpu.CompilerParams(
            dimension_semantics=("parallel",),
            vmem_limit_bytes=_vmem_limit(tile_rows * bytes_per_row, vmem_cap),
        ),
    )(x2)
    return out[:, :d] if d_pad != d else out


# --------------------- tiled-D two-pass online softmax ---------------------

def _stats_kernel(x_ref, m_ref, l_ref):
    # running (max, sum-of-exp) accumulated into the resident output blocks
    k = pl.program_id(1)
    x = x_ref[...].astype(jnp.float32)
    m_chunk = jnp.max(x, axis=-1, keepdims=True)

    @pl.when(k == 0)
    def _():
        m_ref[...] = m_chunk
        l_ref[...] = jnp.sum(jnp.exp(x - m_chunk), axis=-1, keepdims=True)

    @pl.when(k > 0)
    def _():
        m_prev = m_ref[...]
        m_new = jnp.maximum(m_prev, m_chunk)
        l_ref[...] = (l_ref[...] * jnp.exp(m_prev - m_new)
                      + jnp.sum(jnp.exp(x - m_new), axis=-1, keepdims=True))
        m_ref[...] = m_new


def _normalize_kernel(x_ref, m_ref, l_ref, o_ref):
    x = x_ref[...].astype(jnp.float32)
    o_ref[...] = (jnp.exp(x - m_ref[...]) / l_ref[...]).astype(o_ref.dtype)


def _softmax_rows_chunked(x2, num_tc, vmem_cap, chunk_cols=None):
    """Two-pass online softmax for D too large for a (min_rows, D) f32 block."""
    rows, d = x2.shape
    dtype = x2.dtype
    dsize = jnp.dtype(dtype).itemsize
    min_rows = _min_sublane_rows(dtype)

    if chunk_cols is None:
        budget = min(vmem_cap // 2, 64 * _MIB)
        tk = max(128, (budget // (2 * min_rows * (4 * dsize + 8)) // 128) * 128)
        tk = min(tk, 16384)
    else:
        tk = _round_up(chunk_cols, 128)

    # Pad D up to a multiple of the chunk width: the K axis is a reduction, so
    # (unlike the row axis) stale columns in a partial block would contaminate
    # the running max/sum.  Padding value exp()'s to exactly 0.
    d_pad = _round_up(d, tk)
    if d_pad != d:
        x2 = jnp.pad(x2, ((0, 0), (0, d_pad - d)),
                     constant_values=jnp.finfo(dtype).min)
    nk = d_pad // tk

    tile_rows, bytes_per_row = _pick_tile_rows(rows, tk, dtype, num_tc, vmem_cap)
    grid = (pl.cdiv(rows, tile_rows), nk)
    vmem_limit = _vmem_limit(tile_rows * bytes_per_row, vmem_cap)

    # Pass 1: per-row (max, sum-of-exp).
    m, l = pl.pallas_call(
        _stats_kernel,
        out_shape=(jax.ShapeDtypeStruct((rows, 1), jnp.float32),
                   jax.ShapeDtypeStruct((rows, 1), jnp.float32)),
        grid_spec=pltpu.PrefetchScalarGridSpec(
            num_scalar_prefetch=0,
            grid=grid,
            in_specs=[pl.BlockSpec((tile_rows, tk), lambda i, k: (i, k))],
            out_specs=(pl.BlockSpec((tile_rows, 1), lambda i, k: (i, 0)),
                       pl.BlockSpec((tile_rows, 1), lambda i, k: (i, 0))),
        ),
        compiler_params=pltpu.CompilerParams(
            dimension_semantics=("parallel", "arbitrary"),
            vmem_limit_bytes=vmem_limit,
        ),
    )(x2)

    # Pass 2: normalize each chunk with the per-row stats.
    out = pl.pallas_call(
        _normalize_kernel,
        out_shape=jax.ShapeDtypeStruct((rows, d_pad), dtype),
        grid_spec=pltpu.PrefetchScalarGridSpec(
            num_scalar_prefetch=0,
            grid=grid,
            in_specs=[pl.BlockSpec((tile_rows, tk), lambda i, k: (i, k)),
                      pl.BlockSpec((tile_rows, 1), lambda i, k: (i, 0)),
                      pl.BlockSpec((tile_rows, 1), lambda i, k: (i, 0))],
            out_specs=pl.BlockSpec((tile_rows, tk), lambda i, k: (i, k)),
        ),
        compiler_params=pltpu.CompilerParams(
            dimension_semantics=("parallel", "arbitrary"),
            vmem_limit_bytes=vmem_limit,
        ),
    )(x2, m, l)
    return out[:, :d] if d_pad != d else out


# --------------------------------- wrapper ---------------------------------

def efficient_memory_softmax(x, *, force_chunked=False, chunk_cols=None):
    """Forward of EfficientMemorySoftmax: (softmax(x, axis=-1), static_value)."""
    orig_shape = x.shape
    d = orig_shape[-1]
    rows = 1
    for s in orig_shape[:-1]:
        rows *= s
    x2 = x.reshape(rows, d)

    num_tc, vmem_cap, is_v7 = _tpu_info()

    # A (min_rows, D_pad) block must fit the scoped VMEM budget; otherwise use
    # the two-pass online-softmax fallback (matters on v7x's 64 MiB/TC VMEM).
    dsize = jnp.dtype(x.dtype).itemsize
    min_rows = _min_sublane_rows(x.dtype)
    full_d_block_bytes = min_rows * _round_up(d, 128) * (4 * dsize + 8)
    budget = min(vmem_cap // 2, 64 * _MIB)

    if force_chunked or full_d_block_bytes > budget:
        out2 = _softmax_rows_chunked(x2, num_tc, vmem_cap, chunk_cols)
    else:
        out2 = _softmax_rows_full_d(x2, num_tc, vmem_cap, is_v7)

    result = out2.reshape(orig_shape)
    # static_value returned by the autograd.Function (0.0 for the default
    # compress_type='JPEG' path).
    kth_val = jnp.float32(0.0)
    return result, kth_val


if __name__ == "__main__":
    key = jax.random.PRNGKey(0)
    key1, key2 = jax.random.split(key)

    # attention-score-like input (batch=2, heads=4, seq_q=16, seq_k=96):
    # seq_k=96 is NOT a multiple of 128 -> exercises the lane-dense padding path
    x = jax.random.normal(key1, (2, 4, 16, 96), dtype=jnp.float32)
    y, kth_val = efficient_memory_softmax(x)
    y = jax.block_until_ready(y)

    y_ref = jax.nn.softmax(x, axis=-1)
    assert y.shape == x.shape
    assert jnp.max(jnp.abs(y - y_ref)) < 1e-4, "softmax mismatch (full-D path)"
    assert jnp.max(jnp.abs(jnp.sum(y, axis=-1) - 1.0)) < 1e-4, "row-sum mismatch"
    assert float(kth_val) == 0.0

    # exercise the tiled-D online-softmax fallback on a small forced shape
    x2 = jax.random.normal(key2, (2, 8, 320), dtype=jnp.float32)
    y2, _ = efficient_memory_softmax(x2, force_chunked=True, chunk_cols=128)
    y2 = jax.block_until_ready(y2)
    y2_ref = jax.nn.softmax(x2, axis=-1)
    assert jnp.max(jnp.abs(y2 - y2_ref)) < 1e-4, "softmax mismatch (chunked path)"
    assert jnp.max(jnp.abs(jnp.sum(y2, axis=-1) - 1.0)) < 1e-4, "row-sum mismatch (chunked)"

    print("KERNEL_OK")
</pallas_src>

<mosaic_0001>
module attributes {stable_mosaic.version = 11 : i64} {
  func.func @_softmax_kernel(%arg0: i32, %arg1: memref<128x128xf32, #tpu.memory_space<vmem>>, %arg2: memref<128x128xf32, #tpu.memory_space<vmem>>) attributes {dimension_semantics = [#tpu.dimension_semantics<parallel>], iteration_bounds = array<i64: 1>, scalar_prefetch = 0 : i64, scratch_operands = 0 : i64, tpu.core_type = #tpu.core_type<tc>, window_params = [{transform_indices = @transform_0, window_bounds = array<i64: 128, 128>}, {transform_indices = @transform_1, window_bounds = array<i64: 128, 128>}]} {
    %c0 = arith.constant 0 : index
    %c0_0 = arith.constant 0 : index
    %0 = vector.load %arg1[%c0, %c0_0] : memref<128x128xf32, #tpu.memory_space<vmem>>, vector<128x128xf32>
    %cst = arith.constant dense<0xFF800000> : vector<128xf32>
    %1 = vector.multi_reduction <maximumf>, %0, %cst [1] : vector<128x128xf32> to vector<128xf32>
    %2 = vector.shape_cast %1 : vector<128xf32> to vector<128x1xf32>
    %3 = vector.broadcast %2 : vector<128x1xf32> to vector<128x128xf32>
    %4 = arith.subf %0, %3 : vector<128x128xf32>
    %5 = math.exp %4 : vector<128x128xf32>
    %cst_1 = arith.constant dense<0.000000e+00> : vector<128xf32>
    %6 = vector.multi_reduction <add>, %5, %cst_1 [1] : vector<128x128xf32> to vector<128xf32>
    %7 = vector.shape_cast %6 : vector<128xf32> to vector<128x1xf32>
    %8 = vector.broadcast %7 : vector<128x1xf32> to vector<128x128xf32>
    %9 = arith.divf %5, %8 : vector<128x128xf32>
    %c0_2 = arith.constant 0 : index
    %c0_3 = arith.constant 0 : index
    %10 = vector.load %arg2[%c0_2, %c0_3] : memref<128x128xf32, #tpu.memory_space<vmem>>, vector<128x128xf32>
    tpu.vector_store %arg2[%c0_2, %c0_3], %9 {strides = array<i32>} : memref<128x128xf32, #tpu.memory_space<vmem>>, vector<128x128xf32>,
    return
  }
  func.func @transform_0(%arg0: i32) -> (i32, i32) {
    %c0_i32 = arith.constant 0 : i32
    %c0_i32_0 = arith.constant 0 : i32
    return %arg0, %c0_i32 : i32, i32
  }
  func.func @transform_1(%arg0: i32) -> (i32, i32) {
    %c0_i32 = arith.constant 0 : i32
    %c0_i32_0 = arith.constant 0 : i32
    return %arg0, %c0_i32 : i32, i32
  }
}

</mosaic_0001>

<bundles_post_ra>
// kernel: tpu_custom_call.1
= control target key start
LH: loop header
LB: loop body
LE: loop exit
PB: predicated region body
PF: predicated region fallthrough
CT: control target
= control target key end

     0   :  { %6 = vsyncpa [#allocation3], 0  ;;  %s464_s0 = inlined_call_operand.hbm [shape: f32[128,128], index: 0, kind: input, shape index: {}]   ;;  %s465_s1 = inlined_call_operand.hbm [shape: f32[128,128], index: 1, kind: output, shape index: {}]  }
   0x1   :  { %7 = vsyncpa [#allocation4], 0  ;;  %s332_s6 = smov [#allocation2]   ;;  %s284_s10 = scalar_lea.hbm %s464_s0, 2048 }
   0x2   :  { %s13_s7 = sshll.u32 %s332_s6, 4  ;;  %p285_p0 = scmp.ne.s32.totalorder %s464_s0, %s284_s10  ;;  %s14_s7 = int_to_ptr.vmem [resolvable:$true] %s13_s7 }
   0x3   :  { %p288_p1 = scmp.lt.u32.totalorder %s284_s10, %s464_s0 }
   0x5   :  { %p290_p2 = pnand %p288_p1, %p285_p0 }
   0x7   :  { %293 = shalt.err (!%p290_p2)
}
   0x8   :  { %s294_s15 = scalar_lea.vmem %s14_s7, 2048  ;;  %p299_p4 = scmp.lt.s32.totalorder %s14_s7, %s14_s7 }
   0x9   :  { %p295_p3 = scmp.ne.s32.totalorder %s14_s7, %s294_s15  ;;  %p300_p5 = scmp.lt.s32.totalorder %s294_s15, %s294_s15 }
   0xb   :  { %p301_p6 = por %p300_p5, %p299_p4 }
   0xd   :  { %p302_p7 = pnand %p301_p6, %p295_p3 }
   0xf   :  { %305 = shalt.err (!%p302_p7)
}
  0x10   :  { %s333_s16 = smov 128   ;;  %s334_s17 = smov 8  }
  0x11   :  { %19 = dma.hbm_to_vmem [thread:$0]  %s464_s0, 2048, %s14_s7, [#allocation3], %s333_s16, %s333_s16, %s334_s17  }
  0x12   :  { %328 = dma.done.wait [#allocation3], 2048  }
  0x13   :  { %329 = vsyncadd [#allocation3], 4294965248  ;;  %v23_v0 = vld [vmem:[#allocation2] sm:$0xff]  ;;  %v25_v1 = vld [vmem:[#allocation2 + $0x10] sm:$0xff]  ;;  %s335_s0 = smov [#allocation5]  }
  0x14   :  { %39 = vmax.xlane.f32.xlu0 %v23_v0  ;;  %43 = vmax.xlane.f32.xlu1 %v25_v1  ;;  %v24_v2 = vld [vmem:[#allocation2 + $0x8] sm:$0xff]  ;;  %v26_v3 = vld [vmem:[#allocation2 + $0x18] sm:$0xff]  ;;  %v27_v4 = vld [vmem:[#allocation2 + $0x20] sm:$0xff]  ;;  %s204_s20 = sshll.u32 %s335_s0, 4  ;;  %s205_s20 = int_to_ptr.vmem [resolvable:$true] %s204_s20 }
  0x15   :  { %v28_v5 = vld [vmem:[#allocation2 + $0x28] sm:$0xff]  ;;  %v29_v6 = vld [vmem:[#allocation2 + $0x30] sm:$0xff]  ;;  %v30_v7 = vld [vmem:[#allocation2 + $0x38] sm:$0xff]  ;;  %s306_s21 = scalar_lea.vmem %s205_s20, 2048  ;;  %p311_p9 = scmp.lt.s32.totalorder %s205_s20, %s205_s20 }
  0x16   :  { %v31_v8 = vld [vmem:[#allocation2 + $0x40] sm:$0xff]  ;;  %v32_v9 = vld [vmem:[#allocation2 + $0x48] sm:$0xff]  ;;  %v361_v10 = vld [vmem:[#allocation2 + $0x50] sm:$0xff]  ;;  %p307_p8 = scmp.ne.s32.totalorder %s205_s20, %s306_s21  ;;  %p312_p10 = scmp.lt.s32.totalorder %s306_s21, %s306_s21 }
  0x17   :  { %v363_v11 = vld [vmem:[#allocation2 + $0x58] sm:$0xff]  ;;  %v367_v12 = vld [vmem:[#allocation2 + $0x60] sm:$0xff]  ;;  %v369_v13 = vld [vmem:[#allocation2 + $0x68] sm:$0xff] }
  0x18   :  { %41 = vmax.xlane.f32.xlu0 %v24_v2  ;;  %45 = vmax.xlane.f32.xlu1 %v26_v3  ;;  %v373_v14 = vld [vmem:[#allocation2 + $0x70] sm:$0xff]  ;;  %v375_v15 = vld [vmem:[#allocation2 + $0x78] sm:$0xff]  ;;  %p313_p11 = por %p312_p10, %p311_p9 }
  0x1a   :  { %p314_p12 = pnand %p313_p11, %p307_p8 }
  0x1c   :  { %47 = vmax.xlane.f32.xlu0 %v27_v4  ;;  %49 = vmax.xlane.f32.xlu1 %v28_v5 }
  0x20   :  { %51 = vmax.xlane.f32.xlu0 %v29_v6  ;;  %53 = vmax.xlane.f32.xlu1 %v30_v7 }
  0x24   :  { %55 = vmax.xlane.f32.xlu0 %v31_v8  ;;  %57 = vmax.xlane.f32.xlu1 %v32_v9 }
  0x28   :  { %59 = vmax.xlane.f32.xlu0 %v361_v10  ;;  %61 = vmax.xlane.f32.xlu1 %v363_v11 }
  0x2c   :  { %63 = vmax.xlane.f32.xlu0 %v367_v12  ;;  %65 = vmax.xlane.f32.xlu1 %v369_v13 }
  0x30   :  { %67 = vmax.xlane.f32.xlu0 %v373_v14  ;;  %69 = vmax.xlane.f32.xlu1 %v375_v15 }
  0xa1   :  { %v40_v16 = vpop.xlane.xlu0 %39  ;;  %v44_v17 = vpop.xlane.xlu1 %43 }
  0xa2   :  { %v71_v18 = vsub.f32 %v23_v0, %v40_v16  ;;  %v73_v19 = vsub.f32 %v25_v1, %v44_v17 }
  0xa4   :  { %v87_v20 = vmul.f32 1.442695, %v71_v18  ;;  %v91_v21 = vmul.f32 1.442695, %v73_v19 }
  0xa5   :  { %v42_v22 = vpop.xlane.xlu0 %41  ;;  %v46_v23 = vpop.xlane.xlu1 %45 }
  0xa6   :  { %220 = vpow2.f32 %v87_v20  ;;  %v72_v24 = vsub.f32 %v24_v2, %v42_v22  ;;  %v74_v25 = vsub.f32 %v26_v3, %v46_v23 }
  0xa7   :  { %222 = vpow2.f32 %v91_v21 }
  0xa8   :  { %v89_v26 = vmul.f32 1.442695, %v72_v24  ;;  %v93_v27 = vmul.f32 1.442695, %v74_v25 }
  0xa9   :  { %v48_v28 = vpop.xlane.xlu0 %47  ;;  %v50_v29 = vpop.xlane.xlu1 %49 }
  0xaa   :  { %224 = vpow2.f32 %v89_v26  ;;  %v75_v30 = vsub.f32 %v27_v4, %v48_v28  ;;  %v76_v31 = vsub.f32 %v28_v5, %v50_v29 }
  0xab   :  { %226 = vpow2.f32 %v93_v27 }
  0xac   :  { %v95_v32 = vmul.f32 1.442695, %v75_v30  ;;  %v97_v33 = vmul.f32 1.442695, %v76_v31 }
  0xad   :  { %v52_v34 = vpop.xlane.xlu0 %51  ;;  %v54_v35 = vpop.xlane.xlu1 %53 }
  0xae   :  { %228 = vpow2.f32 %v95_v32  ;;  %v77_v36 = vsub.f32 %v29_v6, %v52_v34  ;;  %v78_v37 = vsub.f32 %v30_v7, %v54_v35 }
  0xaf   :  { %230 = vpow2.f32 %v97_v33 }
  0xb0   :  { %v379_v38 = vpop.eup %220  ;;  %v99_v39 = vmul.f32 1.442695, %v77_v36  ;;  %v101_v40 = vmul.f32 1.442695, %v78_v37 }
  0xb1   :  { %119 = vadd.xlane.f32.xlu0 %v379_v38  ;;  %v56_v41 = vpop.xlane.xlu0 %55  ;;  %v58_v42 = vpop.xlane.xlu1 %57 }
  0xb2   :  { %v382_v43 = vpop.eup %222  ;;  %232 = vpow2.f32 %v99_v39  ;;  %v79_v44 = vsub.f32 %v31_v8, %v56_v41  ;;  %v80_v45 = vsub.f32 %v32_v9, %v58_v42 }
  0xb3   :  { %234 = vpow2.f32 %v101_v40 }
  0xb4   :  { %v384_v46 = vpop.eup %224  ;;  %v103_v47 = vmul.f32 1.442695, %v79_v44  ;;  %v105_v48 = vmul.f32 1.442695, %v80_v45 }
  0xb5   :  { %123 = vadd.xlane.f32.xlu0 %v382_v43  ;;  %121 = vadd.xlane.f32.xlu1 %v384_v46  ;;  %v60_v49 = vpop.xlane.xlu0 %59  ;;  %v62_v50 = vpop.xlane.xlu1 %61 }
  0xb6   :  { %v388_v51 = vpop.eup %226  ;;  %236 = vpow2.f32 %v103_v47  ;;  %v81_v52 = vsub.f32 %v361_v10, %v60_v49  ;;  %v82_v53 = vsub.f32 %v363_v11, %v62_v50 }
  0xb7   :  { %238 = vpow2.f32 %v105_v48 }
  0xb8   :  { %v392_v54 = vpop.eup %228  ;;  %v107_v55 = vmul.f32 1.442695, %v81_v52  ;;  %v109_v56 = vmul.f32 1.442695, %v82_v53 }
  0xb9   :  { %125 = vadd.xlane.f32.xlu1 %v388_v51  ;;  %127 = vadd.xlane.f32.xlu0 %v392_v54  ;;  %v64_v57 = vpop.xlane.xlu0 %63  ;;  %v66_v58 = vpop.xlane.xlu1 %65 }
  0xba   :  { %v396_v59 = vpop.eup %230  ;;  %240 = vpow2.f32 %v107_v55  ;;  %v83_v60 = vsub.f32 %v367_v12, %v64_v57  ;;  %v84_v61 = vsub.f32 %v369_v13, %v66_v58 }
  0xbb   :  { %242 = vpow2.f32 %v109_v56 }
  0xbc   :  { %v400_v62 = vpop.eup %232  ;;  %v111_v63 = vmul.f32 1.442695, %v83_v60  ;;  %v113_v0 = vmul.f32 1.442695, %v84_v61 }
  0xbd   :  { %129 = vadd.xlane.f32.xlu1 %v396_v59  ;;  %131 = vadd.xlane.f32.xlu0 %v400_v62  ;;  %v68_v1 = vpop.xlane.xlu0 %67  ;;  %v70_v2 = vpop.xlane.xlu1 %69 }
  0xbe   :  { %v404_v3 = vpop.eup %234  ;;  %244 = vpow2.f32 %v111_v63  ;;  %v85_v4 = vsub.f32 %v373_v14, %v68_v1  ;;  %v86_v5 = vsub.f32 %v375_v15, %v70_v2 }
  0xbf   :  { %246 = vpow2.f32 %v113_v0 }
  0xc0   :  { %v408_v6 = vpop.eup %236  ;;  %v115_v7 = vmul.f32 1.442695, %v85_v4  ;;  %v117_v8 = vmul.f32 1.442695, %v86_v5 }
  0xc1   :  { %133 = vadd.xlane.f32.xlu1 %v404_v3  ;;  %135 = vadd.xlane.f32.xlu0 %v408_v6  ;;  %v412_v9 = vpop.eup %238 }
  0xc2   :  { %248 = vpow2.f32 %v115_v7 }
  0xc3   :  { %250 = vpow2.f32 %v117_v8 }
  0xc4   :  { %v414_v10 = vpop.eup %240 }
  0xc5   :  { %137 = vadd.xlane.f32.xlu1 %v412_v9  ;;  %139 = vadd.xlane.f32.xlu0 %v414_v10  ;;  %v418_v11 = vpop.eup %242 }
  0xc8   :  { %v420_v12 = vpop.eup %244 }
  0xc9   :  { %141 = vadd.xlane.f32.xlu1 %v418_v11  ;;  %143 = vadd.xlane.f32.xlu0 %v420_v12  ;;  %v424_v13 = vpop.eup %246 }
  0xcc   :  { %v426_v14 = vpop.eup %248 }
  0xcd   :  { %145 = vadd.xlane.f32.xlu1 %v424_v13  ;;  %147 = vadd.xlane.f32.xlu0 %v426_v14  ;;  %v430_v15 = vpop.eup %250 }
  0xd1   :  { %149 = vadd.xlane.f32.xlu1 %v430_v15 }
 0x13e   :  { %v120_v16 = vpop.xlane.xlu0 %119 }
 0x13f   :  { %252 = vrcp.f32 %v120_v16 }
 0x142   :  { %v122_v17 = vpop.xlane.xlu1 %121  ;;  %v124_v18 = vpop.xlane.xlu0 %123 }
 0x143   :  { %254 = vrcp.f32 %v122_v17 }
 0x144   :  { %256 = vrcp.f32 %v124_v18 }
 0x146   :  { %v126_v19 = vpop.xlane.xlu1 %125  ;;  %v128_v20 = vpop.xlane.xlu0 %127 }
 0x147   :  { %258 = vrcp.f32 %v126_v19 }
 0x148   :  { %260 = vrcp.f32 %v128_v20 }
 0x149   :  { %v253_v21 = vpop.eup %252 }
 0x14a   :  { %v152_v22 = vmul.f32 %v253_v21, %v379_v38  ;;  %v130_v23 = vpop.xlane.xlu1 %129  ;;  %v132_v24 = vpop.xlane.xlu0 %131 }
 0x14b   :  { %262 = vrcp.f32 %v130_v23 }
 0x14c   :  { %183 = vst [vmem:[#allocation5] sm:$0xff] %v152_v22  ;;  %264 = vrcp.f32 %v132_v24 }
 0x14d   :  { %v255_v25 = vpop.eup %254 }
 0x14e   :  { %v257_v26 = vpop.eup %256  ;;  %v154_v27 = vmul.f32 %v255_v25, %v384_v46  ;;  %v134_v28 = vpop.xlane.xlu1 %133 }
 0x14f   :  { %v136_v29 = vpop.xlane.xlu0 %135  ;;  %v156_v30 = vmul.f32 %v257_v26, %v382_v43  ;;  %266 = vrcp.f32 %v134_v28 }
 0x150   :  { %184 = vst [vmem:[#allocation5 + $0x8] sm:$0xff] %v154_v27  ;;  %268 = vrcp.f32 %v136_v29 }
 0x151   :  { %v259_v31 = vpop.eup %258  ;;  %185 = vst [vmem:[#allocation5 + $0x10] sm:$0xff] %v156_v30 }
 0x152   :  { %v261_v32 = vpop.eup %260  ;;  %v158_v33 = vmul.f32 %v259_v31, %v388_v51  ;;  %v138_v34 = vpop.xlane.xlu1 %137 }
 0x153   :  { %v140_v35 = vpop.xlane.xlu0 %139  ;;  %v160_v36 = vmul.f32 %v261_v32, %v392_v54  ;;  %270 = vrcp.f32 %v138_v34 }
 0x154   :  { %186 = vst [vmem:[#allocation5 + $0x18] sm:$0xff] %v158_v33  ;;  %272 = vrcp.f32 %v140_v35 }
 0x155   :  { %v263_v37 = vpop.eup %262  ;;  %187 = vst [vmem:[#allocation5 + $0x20] sm:$0xff] %v160_v36 }
 0x156   :  { %v265_v38 = vpop.eup %264  ;;  %v162_v39 = vmul.f32 %v263_v37, %v396_v59  ;;  %v142_v40 = vpop.xlane.xlu1 %141 }
 0x157   :  { %v144_v41 = vpop.xlane.xlu0 %143  ;;  %v164_v42 = vmul.f32 %v265_v38, %v400_v62  ;;  %274 = vrcp.f32 %v142_v40 }
 0x158   :  { %188 = vst [vmem:[#allocation5 + $0x28] sm:$0xff] %v162_v39  ;;  %276 = vrcp.f32 %v144_v41 }
 0x159   :  { %v267_v43 = vpop.eup %266  ;;  %189 = vst [vmem:[#allocation5 + $0x30] sm:$0xff] %v164_v42 }
 0x15a   :  { %v269_v44 = vpop.eup %268  ;;  %v166_v45 = vmul.f32 %v267_v43, %v404_v3  ;;  %v146_v46 = vpop.xlane.xlu1 %145 }
 0x15b   :  { %v148_v47 = vpop.xlane.xlu0 %147  ;;  %v168_v48 = vmul.f32 %v269_v44, %v408_v6  ;;  %278 = vrcp.f32 %v146_v46 }
 0x15c   :  { %190 = vst [vmem:[#allocation5 + $0x38] sm:$0xff] %v166_v45  ;;  %280 = vrcp.f32 %v148_v47 }
 0x15d   :  { %v271_v49 = vpop.eup %270  ;;  %191 = vst [vmem:[#allocation5 + $0x40] sm:$0xff] %v168_v48 }
 0x15e   :  { %v273_v50 = vpop.eup %272  ;;  %v170_v51 = vmul.f32 %v271_v49, %v412_v9  ;;  %v150_v52 = vpop.xlane.xlu1 %149 }
 0x15f   :  { %v172_v53 = vmul.f32 %v273_v50, %v414_v10  ;;  %282 = vrcp.f32 %v150_v52 }
 0x160   :  { %192 = vst [vmem:[#allocation5 + $0x48] sm:$0xff] %v170_v51 }
 0x161   :  { %v275_v54 = vpop.eup %274  ;;  %193 = vst [vmem:[#allocation5 + $0x50] sm:$0xff] %v172_v53 }
 0x162   :  { %v277_v55 = vpop.eup %276  ;;  %v174_v56 = vmul.f32 %v275_v54, %v418_v11 }
 0x163   :  { %v176_v57 = vmul.f32 %v277_v55, %v420_v12 }
 0x164   :  { %194 = vst [vmem:[#allocation5 + $0x58] sm:$0xff] %v174_v56 }
 0x165   :  { %v279_v58 = vpop.eup %278  ;;  %195 = vst [vmem:[#allocation5 + $0x60] sm:$0xff] %v176_v57 }
 0x166   :  { %v281_v59 = vpop.eup %280  ;;  %v178_v60 = vmul.f32 %v279_v58, %v424_v13 }
 0x167   :  { %v180_v61 = vmul.f32 %v281_v59, %v426_v14 }
 0x168   :  { %196 = vst [vmem:[#allocation5 + $0x68] sm:$0xff] %v178_v60 }
 0x169   :  { %v283_v62 = vpop.eup %282  ;;  %197 = vst [vmem:[#allocation5 + $0x70] sm:$0xff] %v180_v61 }
 0x16a   :  { %v182_v63 = vmul.f32 %v283_v62, %v430_v15 }
 0x16c   :  { %198 = vst [vmem:[#allocation5 + $0x78] sm:$0xff] %v182_v63 }
 0x16d   :  { %317 = shalt.err (!%p314_p12)
}
 0x16e   :  { %s318_s24 = scalar_lea.hbm %s465_s1, 2048 }
 0x16f   :  { %p319_p13 = scmp.ne.s32.totalorder %s465_s1, %s318_s24  ;;  %p322_p0 = scmp.lt.u32.totalorder %s318_s24, %s465_s1 }
 0x171   :  { %p324_p1 = pnand %p322_p0, %p319_p13 }
 0x173   :  { %327 = shalt.err (!%p324_p1)
}
 0x174   :  { %210 = dma.vmem_to_hbm [thread:$0]  %s205_s20, 2048, %s465_s1, [#allocation4], %s333_s16, %s333_s16, %s334_s17  }
 0x175   :  { %330 = dma.done.wait [#allocation4], 2048  }
 0x176   :  { %331 = vsyncadd [#allocation4], 4294965248 }
 0x177   :  { %214 = vsyncpa [#allocation3], 1 }
 0x178   :  { %215 = vsyncpa [#allocation4], 1 }

</bundles_post_ra>
